<compile_context>
chip_gen: v7x
topology: tpu7x:2x2x1
jax: 0.10.0
libtpu: 0.0.40
codegen_flags: <defaults>
</compile_context>

<pallas_src>
import functools

import jax
import jax.numpy as jnp
from jax import lax
from jax.experimental import pallas as pl
from jax.experimental.pallas import tpu as pltpu

EPS = 1e-5  # nn.InstanceNorm2d default (affine=False, track_running_stats=False)


def _resnet_block_kernel(x_ref, w1_ref, w2_ref, o_ref, *, H, W, C, B, mxu_dtype):
    """Processes B images per grid step.

    x block : (B, C, H*W)  -- spatial axis on lanes (lane-dense, HW mult of 128
                              or full-dim), channels on sublanes.
    weights : (C, 9*C)     -- (cout, kh*kw*cin), tap-major.
    output  : (B, C, H*W)
    """
    HW = H * W
    inv_hw = 1.0 / float(HW)

    # Column-position masks (same for every image / channel), computed once.
    col = lax.broadcasted_iota(jnp.int32, (C, HW), 1) % W
    col_first = col == 0
    col_last = col == (W - 1)

    def shift_left(a):     # out[p] = a[p + 1]        (value at p = HW-1 unused)
        return jnp.concatenate([a[:, 1:], a[:, HW - 1:]], axis=1)

    def shift_right(a):    # out[p] = a[p - 1]        (value at p = 0 unused)
        return jnp.concatenate([a[:, :1], a[:, :HW - 1]], axis=1)

    def shift_rows(a, dh):
        # out[y, :] = a[reflect(y + dh), :] with ReflectionPad2d(1) semantics.
        if dh == -1:   # row 0 <- row 1 ; rows 1..H-1 <- rows 0..H-2
            return jnp.concatenate([a[:, W:2 * W], a[:, :HW - W]], axis=1)
        else:          # dh == +1: rows 0..H-2 <- rows 1..H-1 ; row H-1 <- row H-2
            return jnp.concatenate([a[:, W:], a[:, HW - 2 * W:HW - W]], axis=1)

    def conv3x3(a, w_ref):
        # Reflection-padded 3x3 conv as ONE MXU matmul of depth 9*C.
        # (bias omitted: exactly cancelled by the following InstanceNorm.)
        a_l = shift_left(a)    # a[y, j+1] for interior columns
        a_r = shift_right(a)   # a[y, j-1] for interior columns
        s_w = {
            -1: jnp.where(col_first, a_l, a_r),  # a[y, reflect(j-1)]
            0: a,
            1: jnp.where(col_last, a_r, a_l),    # a[y, reflect(j+1)]
        }
        taps = []
        for dh in (-1, 0, 1):
            for dw in (-1, 0, 1):
                t = s_w[dw]
                if dh != 0:
                    t = shift_rows(t, dh)
                taps.append(t)
        patches = jnp.concatenate(taps, axis=0)          # (9*C, HW), in vregs
        return jnp.dot(w_ref[...].astype(mxu_dtype), patches.astype(mxu_dtype),
                       preferred_element_type=jnp.float32)

    def instance_norm(y):
        # Two-pass per-channel statistics over the spatial (lane) axis.
        mean = jnp.sum(y, axis=1, keepdims=True) * inv_hw
        d = y - mean
        var = jnp.sum(d * d, axis=1, keepdims=True) * inv_hw
        return d * lax.rsqrt(var + EPS)

    # Per-image pipeline (B is small & static).  One grid step amortizes the
    # step overhead + block DMA over B images; reflection and IN statistics
    # stay strictly image-local.
    for b in range(B):
        x = x_ref[b]                                     # (C, HW)
        y = conv3x3(x, w1_ref)
        y = jnp.maximum(instance_norm(y), 0.0)
        y = conv3x3(y, w2_ref)
        y = instance_norm(y)
        # Residual: re-read the input block (resident in VMEM).
        o_ref[b] = (x_ref[b] + y).astype(o_ref.dtype)


def _pick_images_per_step(N, C, HW, budget_bytes=2 << 20):
    """Largest divisor B of N that keeps >= 2 grid steps (v7x dual-TC) and a
    small per-step working set (double-buffered I/O blocks + in-vreg im2col)."""
    best = 1
    for b in range(1, N + 1):
        if N % b:
            continue
        approx_bytes = 4 * b * HW * (2 * 2 * C + 9 * C + C)   # f32 estimate
        if approx_bytes > budget_bytes:
            continue
        if N // b >= 2:
            best = b
    return best


def resnet_block(x_nchw, w1, b1, w2, b2, *, mxu_dtype=jnp.float32):
    """x: (N, C, H, W) f32; w*: (3, 3, Cin, Cout) HWIO; b*: (C,).

    The conv biases are exactly cancelled by the following InstanceNorm
    (affine=False), so they are not passed to the kernel."""
    del b1, b2
    N, C, H, W = x_nchw.shape
    assert H >= 2 and W >= 2, "ReflectionPad2d(1) requires H >= 2 and W >= 2"
    HW = H * W
    B = _pick_images_per_step(N, C, HW)

    # NCHW flattened -> (N, C, H*W); spatial axis is the lane-dense minor dim.
    x_flat = x_nchw.reshape(N, C, HW)

    def pack_w(w):
        # HWIO (3,3,Cin,Cout) -> (Cout, 9*Cin): tap-major then input channel,
        # matching the im2col row order built inside the kernel.
        return jnp.transpose(w, (3, 0, 1, 2)).reshape(C, 9 * C)

    kernel = functools.partial(_resnet_block_kernel, H=H, W=W, C=C, B=B,
                               mxu_dtype=mxu_dtype)
    out_flat = pl.pallas_call(
        kernel,
        out_shape=jax.ShapeDtypeStruct((N, C, HW), x_nchw.dtype),
        grid_spec=pltpu.PrefetchScalarGridSpec(
            num_scalar_prefetch=0,
            grid=(N // B,),
            in_specs=[
                pl.BlockSpec((B, C, HW), lambda n: (n, 0, 0)),
                pl.BlockSpec((C, 9 * C), lambda n: (0, 0)),
                pl.BlockSpec((C, 9 * C), lambda n: (0, 0)),
            ],
            out_specs=pl.BlockSpec((B, C, HW), lambda n: (n, 0, 0)),
        ),
        compiler_params=pltpu.CompilerParams(
            dimension_semantics=("parallel",)),
    )(x_flat, pack_w(w1), pack_w(w2))
    return out_flat.reshape(N, C, H, W)


def ref_resnet_block(x_nchw, w1, b1, w2, b2):
    """Pure-JAX reference matching the PyTorch module (NCHW)."""
    def conv(x, w, b):
        xp = jnp.pad(x, ((0, 0), (0, 0), (1, 1), (1, 1)), mode="reflect")
        y = lax.conv_general_dilated(
            xp, w, window_strides=(1, 1), padding="VALID",
            dimension_numbers=("NCHW", "HWIO", "NCHW"))
        return y + b.reshape(1, -1, 1, 1)

    def inorm(y):
        m = jnp.mean(y, axis=(2, 3), keepdims=True)
        v = jnp.mean(jnp.square(y - m), axis=(2, 3), keepdims=True)
        return (y - m) * lax.rsqrt(v + EPS)

    y = jnp.maximum(inorm(conv(x_nchw, w1, b1)), 0.0)
    y = inorm(conv(y, w2, b2))
    return x_nchw + y


if __name__ == "__main__":
    N, C, H, W = 2, 4, 16, 16
    key = jax.random.PRNGKey(0)
    k1, k2, k3, k4, k5 = jax.random.split(key, 5)

    x = jax.random.normal(k1, (N, C, H, W), jnp.float32)
    w1 = jax.random.normal(k2, (3, 3, C, C), jnp.float32) * 0.1   # HWIO
    b1 = jax.random.normal(k3, (C,), jnp.float32) * 0.1
    w2 = jax.random.normal(k4, (3, 3, C, C), jnp.float32) * 0.1
    b2 = jax.random.normal(k5, (C,), jnp.float32) * 0.1

    out = resnet_block(x, w1, b1, w2, b2)
    jax.block_until_ready(out)

    ref = ref_resnet_block(x, w1, b1, w2, b2)
    err = float(jnp.max(jnp.abs(out - ref)))
    assert jnp.allclose(out, ref, atol=2e-3, rtol=2e-3), f"max abs err {err}"
    print("KERNEL_OK")
</pallas_src>

<mosaic_0001>
module attributes {stable_mosaic.version = 11 : i64} {
  func.func @_resnet_block_kernel(%arg0: i32, %arg1: memref<1x4x256xf32, #tpu.memory_space<vmem>>, %arg2: memref<4x36xf32, #tpu.memory_space<vmem>>, %arg3: memref<4x36xf32, #tpu.memory_space<vmem>>, %arg4: memref<1x4x256xf32, #tpu.memory_space<vmem>>) attributes {dimension_semantics = [#tpu.dimension_semantics<parallel>], iteration_bounds = array<i64: 2>, scalar_prefetch = 0 : i64, scratch_operands = 0 : i64, tpu.core_type = #tpu.core_type<tc>, window_params = [{transform_indices = @transform_0, window_bounds = array<i64: 1, 4, 256>}, {pipeline_mode = #tpu.pipeline_mode<synchronous>, transform_indices = @transform_1, window_bounds = array<i64: 4, 36>}, {pipeline_mode = #tpu.pipeline_mode<synchronous>, transform_indices = @transform_2, window_bounds = array<i64: 4, 36>}, {transform_indices = @transform_3, window_bounds = array<i64: 1, 4, 256>}]} {
    %0 = tpu.iota {dimensions = array<i32: 1>} : vector<4x256xi32>
    %c16_i32 = arith.constant 16 : i32
    %c0_i32 = arith.constant 0 : i32
    %1 = arith.cmpi eq, %c16_i32, %c0_i32 : i32
    %c1_i32 = arith.constant 1 : i32
    %2 = arith.select %1, %c1_i32, %c16_i32 : i32
    %3 = vector.broadcast %2 : i32 to vector<4x256xi32>
    %4 = arith.remsi %0, %3 : vector<4x256xi32>
    %c0_i32_0 = arith.constant 0 : i32
    %5 = vector.broadcast %c0_i32_0 : i32 to vector<4x256xi32>
    %6 = arith.cmpi ne, %4, %5 : vector<4x256xi32>
    %c0_i32_1 = arith.constant 0 : i32
    %7 = vector.broadcast %c0_i32_1 : i32 to vector<4x256xi32>
    %8 = arith.cmpi slt, %4, %7 : vector<4x256xi32>
    %c0_i32_2 = arith.constant 0 : i32
    %9 = arith.cmpi slt, %2, %c0_i32_2 : i32
    %10 = vector.broadcast %9 : i1 to vector<4x256xi1>
    %11 = vector.broadcast %10 : vector<4x256xi1> to vector<4x256xi1>
    %12 = arith.xori %8, %11 : vector<4x256xi1>
    %13 = arith.andi %12, %6 : vector<4x256xi1>
    %14 = vector.broadcast %2 : i32 to vector<4x256xi32>
    %15 = arith.addi %4, %14 : vector<4x256xi32>
    %16 = arith.select %13, %15, %4 : vector<4x256xi1>, vector<4x256xi32>
    %c0_i32_3 = arith.constant 0 : i32
    %17 = vector.broadcast %c0_i32_3 : i32 to vector<4x256xi32>
    %18 = arith.cmpi eq, %16, %17 : vector<4x256xi32>
    %c15_i32 = arith.constant 15 : i32
    %19 = vector.broadcast %c15_i32 : i32 to vector<4x256xi32>
    %20 = arith.cmpi eq, %16, %19 : vector<4x256xi32>
    %c0 = arith.constant 0 : index
    %c0_4 = arith.constant 0 : index
    %c0_5 = arith.constant 0 : index
    %21 = vector.load %arg1[%c0, %c0_4, %c0_5] : memref<1x4x256xf32, #tpu.memory_space<vmem>>, vector<1x4x256xf32>
    %22 = vector.shape_cast %21 : vector<1x4x256xf32> to vector<4x256xf32>
    %23 = vector.extract_strided_slice %22 {offsets = [0, 1], sizes = [4, 255], strides = [1, 1]} : vector<4x256xf32> to vector<4x255xf32>
    %24 = vector.extract_strided_slice %22 {offsets = [0, 255], sizes = [4, 1], strides = [1, 1]} : vector<4x256xf32> to vector<4x1xf32>
    %25 = tpu.concatenate %23, %24 in 1 : vector<4x255xf32>, vector<4x1xf32> -> vector<4x256xf32>
    %26 = vector.extract_strided_slice %22 {offsets = [0, 0], sizes = [4, 1], strides = [1, 1]} : vector<4x256xf32> to vector<4x1xf32>
    %27 = vector.extract_strided_slice %22 {offsets = [0, 0], sizes = [4, 255], strides = [1, 1]} : vector<4x256xf32> to vector<4x255xf32>
    %28 = tpu.concatenate %26, %27 in 1 : vector<4x1xf32>, vector<4x255xf32> -> vector<4x256xf32>
    %29 = arith.select %18, %25, %28 : vector<4x256xi1>, vector<4x256xf32>
    %30 = arith.select %20, %28, %25 : vector<4x256xi1>, vector<4x256xf32>
    %31 = vector.extract_strided_slice %29 {offsets = [0, 16], sizes = [4, 16], strides = [1, 1]} : vector<4x256xf32> to vector<4x16xf32>
    %32 = vector.extract_strided_slice %29 {offsets = [0, 0], sizes = [4, 240], strides = [1, 1]} : vector<4x256xf32> to vector<4x240xf32>
    %33 = tpu.concatenate %31, %32 in 1 : vector<4x16xf32>, vector<4x240xf32> -> vector<4x256xf32>
    %34 = vector.extract_strided_slice %22 {offsets = [0, 16], sizes = [4, 16], strides = [1, 1]} : vector<4x256xf32> to vector<4x16xf32>
    %35 = vector.extract_strided_slice %22 {offsets = [0, 0], sizes = [4, 240], strides = [1, 1]} : vector<4x256xf32> to vector<4x240xf32>
    %36 = tpu.concatenate %34, %35 in 1 : vector<4x16xf32>, vector<4x240xf32> -> vector<4x256xf32>
    %37 = vector.extract_strided_slice %30 {offsets = [0, 16], sizes = [4, 16], strides = [1, 1]} : vector<4x256xf32> to vector<4x16xf32>
    %38 = vector.extract_strided_slice %30 {offsets = [0, 0], sizes = [4, 240], strides = [1, 1]} : vector<4x256xf32> to vector<4x240xf32>
    %39 = tpu.concatenate %37, %38 in 1 : vector<4x16xf32>, vector<4x240xf32> -> vector<4x256xf32>
    %40 = vector.extract_strided_slice %29 {offsets = [0, 16], sizes = [4, 240], strides = [1, 1]} : vector<4x256xf32> to vector<4x240xf32>
    %41 = vector.extract_strided_slice %29 {offsets = [0, 224], sizes = [4, 16], strides = [1, 1]} : vector<4x256xf32> to vector<4x16xf32>
    %42 = tpu.concatenate %40, %41 in 1 : vector<4x240xf32>, vector<4x16xf32> -> vector<4x256xf32>
    %43 = vector.extract_strided_slice %22 {offsets = [0, 16], sizes = [4, 240], strides = [1, 1]} : vector<4x256xf32> to vector<4x240xf32>
    %44 = vector.extract_strided_slice %22 {offsets = [0, 224], sizes = [4, 16], strides = [1, 1]} : vector<4x256xf32> to vector<4x16xf32>
    %45 = tpu.concatenate %43, %44 in 1 : vector<4x240xf32>, vector<4x16xf32> -> vector<4x256xf32>
    %46 = vector.extract_strided_slice %30 {offsets = [0, 16], sizes = [4, 240], strides = [1, 1]} : vector<4x256xf32> to vector<4x240xf32>
    %47 = vector.extract_strided_slice %30 {offsets = [0, 224], sizes = [4, 16], strides = [1, 1]} : vector<4x256xf32> to vector<4x16xf32>
    %48 = tpu.concatenate %46, %47 in 1 : vector<4x240xf32>, vector<4x16xf32> -> vector<4x256xf32>
    %49 = tpu.concatenate %33, %36, %39, %29, %22, %30, %42, %45, %48 in 0 : vector<4x256xf32>, vector<4x256xf32>, vector<4x256xf32>, vector<4x256xf32>, vector<4x256xf32>, vector<4x256xf32>, vector<4x256xf32>, vector<4x256xf32>, vector<4x256xf32> -> vector<36x256xf32>
    %c0_6 = arith.constant 0 : index
    %c0_7 = arith.constant 0 : index
    %50 = vector.load %arg2[%c0_6, %c0_7] : memref<4x36xf32, #tpu.memory_space<vmem>>, vector<4x36xf32>
    %cst = arith.constant dense<0.000000e+00> : vector<4x256xf32>
    %51 = tpu.matmul %50, %49, %cst {dimension_numbers = #tpu.dot_dimension_numbers<[1], [0], [0], [1], [0, 0, 1, 1], [], []>} : vector<4x36xf32>, vector<36x256xf32>, vector<4x256xf32> -> vector<4x256xf32>
    %cst_8 = arith.constant dense<0.000000e+00> : vector<4xf32>
    %52 = vector.multi_reduction <add>, %51, %cst_8 [1] : vector<4x256xf32> to vector<4xf32>
    %53 = vector.shape_cast %52 : vector<4xf32> to vector<4x1xf32>
    %cst_9 = arith.constant 3.906250e-03 : f32
    %54 = vector.broadcast %cst_9 : f32 to vector<4x1xf32>
    %55 = arith.mulf %53, %54 : vector<4x1xf32>
    %56 = vector.broadcast %55 : vector<4x1xf32> to vector<4x256xf32>
    %57 = arith.subf %51, %56 : vector<4x256xf32>
    %58 = arith.mulf %57, %57 : vector<4x256xf32>
    %cst_10 = arith.constant dense<0.000000e+00> : vector<4xf32>
    %59 = vector.multi_reduction <add>, %58, %cst_10 [1] : vector<4x256xf32> to vector<4xf32>
    %60 = vector.shape_cast %59 : vector<4xf32> to vector<4x1xf32>
    %cst_11 = arith.constant 3.906250e-03 : f32
    %61 = vector.broadcast %cst_11 : f32 to vector<4x1xf32>
    %62 = arith.mulf %60, %61 : vector<4x1xf32>
    %cst_12 = arith.constant 9.99999974E-6 : f32
    %63 = vector.broadcast %cst_12 : f32 to vector<4x1xf32>
    %64 = arith.addf %62, %63 : vector<4x1xf32>
    %65 = math.rsqrt %64 : vector<4x1xf32>
    %66 = vector.broadcast %65 : vector<4x1xf32> to vector<4x256xf32>
    %67 = arith.mulf %57, %66 : vector<4x256xf32>
    %cst_13 = arith.constant 0.000000e+00 : f32
    %68 = vector.broadcast %cst_13 : f32 to vector<4x256xf32>
    %69 = arith.maximumf %67, %68 : vector<4x256xf32>
    %70 = vector.extract_strided_slice %69 {offsets = [0, 1], sizes = [4, 255], strides = [1, 1]} : vector<4x256xf32> to vector<4x255xf32>
    %71 = vector.extract_strided_slice %69 {offsets = [0, 255], sizes = [4, 1], strides = [1, 1]} : vector<4x256xf32> to vector<4x1xf32>
    %72 = tpu.concatenate %70, %71 in 1 : vector<4x255xf32>, vector<4x1xf32> -> vector<4x256xf32>
    %73 = vector.extract_strided_slice %69 {offsets = [0, 0], sizes = [4, 1], strides = [1, 1]} : vector<4x256xf32> to vector<4x1xf32>
    %74 = vector.extract_strided_slice %69 {offsets = [0, 0], sizes = [4, 255], strides = [1, 1]} : vector<4x256xf32> to vector<4x255xf32>
    %75 = tpu.concatenate %73, %74 in 1 : vector<4x1xf32>, vector<4x255xf32> -> vector<4x256xf32>
    %76 = arith.select %18, %72, %75 : vector<4x256xi1>, vector<4x256xf32>
    %77 = arith.select %20, %75, %72 : vector<4x256xi1>, vector<4x256xf32>
    %78 = vector.extract_strided_slice %76 {offsets = [0, 16], sizes = [4, 16], strides = [1, 1]} : vector<4x256xf32> to vector<4x16xf32>
    %79 = vector.extract_strided_slice %76 {offsets = [0, 0], sizes = [4, 240], strides = [1, 1]} : vector<4x256xf32> to vector<4x240xf32>
    %80 = tpu.concatenate %78, %79 in 1 : vector<4x16xf32>, vector<4x240xf32> -> vector<4x256xf32>
    %81 = vector.extract_strided_slice %69 {offsets = [0, 16], sizes = [4, 16], strides = [1, 1]} : vector<4x256xf32> to vector<4x16xf32>
    %82 = vector.extract_strided_slice %69 {offsets = [0, 0], sizes = [4, 240], strides = [1, 1]} : vector<4x256xf32> to vector<4x240xf32>
    %83 = tpu.concatenate %81, %82 in 1 : vector<4x16xf32>, vector<4x240xf32> -> vector<4x256xf32>
    %84 = vector.extract_strided_slice %77 {offsets = [0, 16], sizes = [4, 16], strides = [1, 1]} : vector<4x256xf32> to vector<4x16xf32>
    %85 = vector.extract_strided_slice %77 {offsets = [0, 0], sizes = [4, 240], strides = [1, 1]} : vector<4x256xf32> to vector<4x240xf32>
    %86 = tpu.concatenate %84, %85 in 1 : vector<4x16xf32>, vector<4x240xf32> -> vector<4x256xf32>
    %87 = vector.extract_strided_slice %76 {offsets = [0, 16], sizes = [4, 240], strides = [1, 1]} : vector<4x256xf32> to vector<4x240xf32>
    %88 = vector.extract_strided_slice %76 {offsets = [0, 224], sizes = [4, 16], strides = [1, 1]} : vector<4x256xf32> to vector<4x16xf32>
    %89 = tpu.concatenate %87, %88 in 1 : vector<4x240xf32>, vector<4x16xf32> -> vector<4x256xf32>
    %90 = vector.extract_strided_slice %69 {offsets = [0, 16], sizes = [4, 240], strides = [1, 1]} : vector<4x256xf32> to vector<4x240xf32>
    %91 = vector.extract_strided_slice %69 {offsets = [0, 224], sizes = [4, 16], strides = [1, 1]} : vector<4x256xf32> to vector<4x16xf32>
    %92 = tpu.concatenate %90, %91 in 1 : vector<4x240xf32>, vector<4x16xf32> -> vector<4x256xf32>
    %93 = vector.extract_strided_slice %77 {offsets = [0, 16], sizes = [4, 240], strides = [1, 1]} : vector<4x256xf32> to vector<4x240xf32>
    %94 = vector.extract_strided_slice %77 {offsets = [0, 224], sizes = [4, 16], strides = [1, 1]} : vector<4x256xf32> to vector<4x16xf32>
    %95 = tpu.concatenate %93, %94 in 1 : vector<4x240xf32>, vector<4x16xf32> -> vector<4x256xf32>
    %96 = tpu.concatenate %80, %83, %86, %76, %69, %77, %89, %92, %95 in 0 : vector<4x256xf32>, vector<4x256xf32>, vector<4x256xf32>, vector<4x256xf32>, vector<4x256xf32>, vector<4x256xf32>, vector<4x256xf32>, vector<4x256xf32>, vector<4x256xf32> -> vector<36x256xf32>
    %c0_14 = arith.constant 0 : index
    %c0_15 = arith.constant 0 : index
    %97 = vector.load %arg3[%c0_14, %c0_15] : memref<4x36xf32, #tpu.memory_space<vmem>>, vector<4x36xf32>
    %cst_16 = arith.constant dense<0.000000e+00> : vector<4x256xf32>
    %98 = tpu.matmul %97, %96, %cst_16 {dimension_numbers = #tpu.dot_dimension_numbers<[1], [0], [0], [1], [0, 0, 1, 1], [], []>} : vector<4x36xf32>, vector<36x256xf32>, vector<4x256xf32> -> vector<4x256xf32>
    %cst_17 = arith.constant dense<0.000000e+00> : vector<4xf32>
    %99 = vector.multi_reduction <add>, %98, %cst_17 [1] : vector<4x256xf32> to vector<4xf32>
    %100 = vector.shape_cast %99 : vector<4xf32> to vector<4x1xf32>
    %cst_18 = arith.constant 3.906250e-03 : f32
    %101 = vector.broadcast %cst_18 : f32 to vector<4x1xf32>
    %102 = arith.mulf %100, %101 : vector<4x1xf32>
    %103 = vector.broadcast %102 : vector<4x1xf32> to vector<4x256xf32>
    %104 = arith.subf %98, %103 : vector<4x256xf32>
    %105 = arith.mulf %104, %104 : vector<4x256xf32>
    %cst_19 = arith.constant dense<0.000000e+00> : vector<4xf32>
    %106 = vector.multi_reduction <add>, %105, %cst_19 [1] : vector<4x256xf32> to vector<4xf32>
    %107 = vector.shape_cast %106 : vector<4xf32> to vector<4x1xf32>
    %cst_20 = arith.constant 3.906250e-03 : f32
    %108 = vector.broadcast %cst_20 : f32 to vector<4x1xf32>
    %109 = arith.mulf %107, %108 : vector<4x1xf32>
    %cst_21 = arith.constant 9.99999974E-6 : f32
    %110 = vector.broadcast %cst_21 : f32 to vector<4x1xf32>
    %111 = arith.addf %109, %110 : vector<4x1xf32>
    %112 = math.rsqrt %111 : vector<4x1xf32>
    %113 = vector.broadcast %112 : vector<4x1xf32> to vector<4x256xf32>
    %114 = arith.mulf %104, %113 : vector<4x256xf32>
    %c0_22 = arith.constant 0 : index
    %c0_23 = arith.constant 0 : index
    %c0_24 = arith.constant 0 : index
    %115 = vector.load %arg1[%c0_22, %c0_23, %c0_24] : memref<1x4x256xf32, #tpu.memory_space<vmem>>, vector<1x4x256xf32>
    %116 = vector.shape_cast %115 : vector<1x4x256xf32> to vector<4x256xf32>
    %117 = arith.addf %116, %114 : vector<4x256xf32>
    %c0_25 = arith.constant 0 : index
    %c0_26 = arith.constant 0 : index
    %c0_27 = arith.constant 0 : index
    %118 = vector.load %arg4[%c0_25, %c0_26, %c0_27] : memref<1x4x256xf32, #tpu.memory_space<vmem>>, vector<1x4x256xf32>
    %119 = vector.shape_cast %118 : vector<1x4x256xf32> to vector<4x256xf32>
    %120 = vector.shape_cast %117 : vector<4x256xf32> to vector<1x4x256xf32>
    tpu.vector_store %arg4[%c0_25, %c0_26, %c0_27], %120 {strides = array<i32>} : memref<1x4x256xf32, #tpu.memory_space<vmem>>, vector<1x4x256xf32>,
    return
  }
  func.func @transform_0(%arg0: i32) -> (i32, i32, i32) {
    %c0_i32 = arith.constant 0 : i32
    %c0_i32_0 = arith.constant 0 : i32
    %c0_i32_1 = arith.constant 0 : i32
    return %arg0, %c0_i32, %c0_i32_0 : i32, i32, i32
  }
  func.func @transform_1(%arg0: i32) -> (i32, i32) {
    %c0_i32 = arith.constant 0 : i32
    %c0_i32_0 = arith.constant 0 : i32
    %c0_i32_1 = arith.constant 0 : i32
    return %c0_i32, %c0_i32_0 : i32, i32
  }
  func.func @transform_2(%arg0: i32) -> (i32, i32) {
    %c0_i32 = arith.constant 0 : i32
    %c0_i32_0 = arith.constant 0 : i32
    %c0_i32_1 = arith.constant 0 : i32
    return %c0_i32, %c0_i32_0 : i32, i32
  }
  func.func @transform_3(%arg0: i32) -> (i32, i32, i32) {
    %c0_i32 = arith.constant 0 : i32
    %c0_i32_0 = arith.constant 0 : i32
    %c0_i32_1 = arith.constant 0 : i32
    return %arg0, %c0_i32, %c0_i32_0 : i32, i32, i32
  }
}

</mosaic_0001>

<bundles_post_ra>
// kernel: tpu_custom_call.1
= control target key start
LH: loop header
LB: loop body
LE: loop exit
PB: predicated region body
PF: predicated region fallthrough
CT: control target
= control target key end

     0   :  { %8 = vsyncpa [#allocation3], 0  ;;  %s1406_s0 = inlined_call_operand.hbm [shape: f32[2,4,256], index: 0, kind: input, shape index: {}]   ;;  %s1407_s1 = inlined_call_operand.hbm [shape: f32[4,36], index: 1, kind: input, shape index: {}]   ;;  %s1408_s2 = inlined_call_operand.vmem [shape: f32[4,36], index: 2, kind: input, shape index: {}]   ;;  %s1409_s3 = inlined_call_operand.hbm [shape: f32[2,4,256], index: 3, kind: output, shape index: {}]  }
   0x1   :  { %10 = vsyncpa [#allocation3 + $0x1], 0 }
   0x2   :  { %11 = vsyncpa [#allocation6], 0 }
   0x3   :  { %12 = vsyncpa [#allocation4], 0 }
   0x4   :  { %14 = vsyncpa [#allocation4 + $0x1], 0  ;;  %s1043_s12 = smov 0   ;;  %s1045_s13 = smov 0  }
   0x5   :  { %s1047_s14 = smov 0   ;;  %s1049_s15 = smov 0  }
   0x6 LB: > { %s1064_s16 = sadd.s32 4294967295, %s1013_s15   ;;  %s748_s17 = sadd.s32 4294967294, %s1013_s15   ;;  %s1013_s15 = sphi %s1049_s15, %s1441_s15   ;;  %s1009_s14 = sphi %s1047_s14, %s1440_s14   ;;  %s1005_s13 = sphi %s1045_s13, %s1439_s13   ;;  %s1001_s12 = sphi %s1043_s12, %s1438_s12  }
   0x7   : > { %p40_p0 = scmp.ne.s32.totalorder %s1005_s13, %s1001_s12  ;;  %p1410_p1 = scmp.eq.s32.totalorder %s1064_s16, 0 }
   0x8   : > { %p112_p3 = scmp.eq.s32.totalorder %s748_s17, 1  ;;  %p749_p5 = scmp.ge.s32.totalorder %s1013_s15, 1 }
   0x9   : > { %p1073_p4 = por %p1410_p1, %p40_p0  ;;  %p119_p7 = scmp.lt.s32.totalorder %s1013_s15, 3 }
   0xa   : > { %p1078_p6 = por %p112_p3, %p40_p0  ;;  %s1015_s21 = smov [#allocation5]  }
   0xb   : > { %s1413_s18 = scalar_select %p1073_p4, 1, 0 }
   0xc   : > { %s1414_s19 = scalar_select %p1078_p6, 1, 0 }
   0xd   : > { %p1083_p8 = pnand %p749_p5, %p119_p7  ;;  %s132_s22 = sshll.u32 %s1015_s21, 4  ;;  %s133_s22 = int_to_ptr.vmem [resolvable:$true] %s132_s22 }
   0xe   : > { %s1091_s23 = sadd.s32 1, %s1013_s15   ;;  %s27_s27 = sadd.s32 1, %s1009_s14 }
   0xf   : > { %s1415_s20 = scalar_select %p1083_p8, 1, 0 }
  0x10   : > { %p796_p10 = pneg %p1083_p8  ;;  %s24_s25 = ssub.s32 %s1013_s15, %s1091_s23 }
  0x11   : > { %p1101_p12 = scmp.eq.s32.totalorder %s24_s25, 0  ;;  %s885_s30 = scalar_lea.hbm %s1407_s1, 64 }
  0x12   : > { %p1095_p11 = pnand %p796_p10, %p1410_p1  ;;  %p886_p0 = scmp.ne.s32.totalorder %s1407_s1, %s885_s30 }
  0x13   : > { %s1417_s26 = scalar_select %p1101_p12, 1, 0 }
  0x14   : > { %p887_p3 = pneg %p1095_p11  ;;  %p892_p10 = scmp.lt.u32.totalorder %s885_s30, %s1407_s1 }
  0x16   : > { %p888_p5 = pnand %p887_p3, %p886_p0 }
  0x18   : > { %p889_p7 = pneg %p888_p5 }
  0x1a   : > { %p894_p9 = pnand %p892_p10, %p889_p7 }
  0x1c   : > { %897 = shalt.err (!%p894_p9)
}
  0x1d   : > { %s898_s8 = scalar_lea.vmem %s133_s22, 64  ;;  %p906_p6 = scmp.lt.s32.totalorder %s133_s22, %s133_s22 }
  0x1e   : > { %p899_p1 = scmp.ne.s32.totalorder %s133_s22, %s898_s8  ;;  %p907_p4 = scmp.lt.s32.totalorder %s898_s8, %s898_s8 }
  0x20   : > { %p901_p2 = pnand %p899_p1, %p887_p3  ;;  %p908_p8 = por %p907_p4, %p906_p6 }
  0x22   : > { %p902_p13 = pneg %p901_p2 }
  0x24   : > { %p909_p12 = pnand %p908_p8, %p902_p13 }
  0x26   : > { %912 = shalt.err (!%p909_p12)
}
  0x27   : > { %799 = dma.hbm_to_vmem [thread:$0]  (!%p1095_p11), %s1407_s1, 64, %s133_s22, [#allocation6]  }
  0x28   : > { %p1418_p1 = scmp.ne.s32.totalorder %s1417_s26, 0  ;;  %p35_p2 = scmp.eq.s32.totalorder %s1013_s15, 0 }
  0x29   : > { %p1419_p4 = scmp.ne.s32.totalorder %s1009_s14, %s1005_s13  ;;  %p1420_p6 = scmp.eq.s32.totalorder %s1064_s16, 1 }
  0x2a   : > { %s1127_s11 = scalar_select %p1418_p1, %s1009_s14, %s27_s27  }
  0x2b   : > { %p1135_p8 = por %p1420_p6, %p1419_p4  ;;  %p809_p9 = scmp.lt.s32.totalorder %s1013_s15, 2 }
  0x2c   : > { %s146_s21 = sand.u32 1, %s1009_s14   ;;  %p1422_p12 = pmov %p1419_p4 }
  0x2d   : > { %s752_s24 = sshll.u32 %s146_s21, 3  ;;  %s770_s25 = sshll.u32 %s1013_s15, 7 }
  0x2e   : > { %p36_p13 = por %p35_p2, %p1422_p12  ;;  %s1148_s22 = scalar_lea.hbm %s1406_s0, %s770_s25 }
  0x2f   : > { %s150_s26 = scalar_lea.vmem [#allocation2], %s752_s24  ;;  %s147_s4 = scalar_lea.sflag [#allocation3], %s146_s21 }
  0x30   : > { %s158_s27 = sshll.u32 %s150_s26, 4  ;;  %p1150_p11 = pnand %p809_p9, %p36_p13  ;;  %s1154_s27 = int_to_ptr.vmem [resolvable:$true] %s158_s27 }
  0x31   : > { %s913_s5 = scalar_lea.hbm %s1148_s22, 128  ;;  %s918_s8 = scalar_lea.hbm %s1406_s0, 256 }
  0x32   : > { %p914_p0 = scmp.ne.s32.totalorder %s1148_s22, %s913_s5  ;;  %p915_p3 = pneg %p1150_p11 }
  0x33   : > { %p919_p10 = scmp.lt.u32.totalorder %s1148_s22, %s1406_s0  ;;  %p920_p1 = scmp.lt.u32.totalorder %s918_s8, %s913_s5 }
  0x34   : > { %p916_p5 = pnand %p915_p3, %p914_p0  ;;  %p922_p4 = scmp.lt.u32.totalorder %s913_s5, %s1148_s22 }
  0x35   : > { %p921_p2 = por %p920_p1, %p919_p10 }
  0x36   : > { %p917_p7 = pneg %p916_p5 }
  0x37   : > { %p923_p6 = por %p922_p4, %p921_p2 }
  0x39   : > { %p924_p9 = pnand %p923_p6, %p917_p7 }
  0x3b   : > { %927 = shalt.err (!%p924_p9)
}
  0x3c   : > { %s928_s21 = scalar_lea.vmem %s1154_s27, 128  ;;  %s1016_s24 = smov [#allocation2]  }
  0x3d   : > { %p929_p12 = scmp.ne.s32.totalorder %s1154_s27, %s928_s21  ;;  %s933_s25 = sshll.u32 %s1016_s24, 4  ;;  %s934_s25 = int_to_ptr.vmem [resolvable:$false] %s933_s25 }
  0x3e   : > { %s935_s28 = scalar_lea.vmem %s934_s25, 256  ;;  %p936_p5 = scmp.lt.s32.totalorder %s1154_s27, %s934_s25 }
  0x3f   : > { %p931_p13 = pnand %p929_p12, %p915_p3  ;;  %p937_p10 = scmp.lt.s32.totalorder %s935_s28, %s928_s21 }
  0x41   : > { %p932_p0 = pneg %p931_p13  ;;  %p938_p1 = por %p937_p10, %p936_p5 }
  0x43   : > { %p939_p2 = pnand %p938_p1, %p932_p0 }
  0x45   : > { %942 = shalt.err (!%p939_p2)
}
  0x46   : > { %803 = dma.hbm_to_vmem [thread:$0]  (!%p1150_p11), %s1148_s22, 128, %s1154_s27, %s147_s4  }
  0x47   : > { %p1424_p7 = scmp.ne.s32.totalorder %s1415_s20, 0 }
  0x48   : > { %s1184_s29 = sand.u32 (!%p1424_p7), 1, %s1005_s13   ;;  %p1425_p3 = scmp.ne.s32.totalorder (!%p1424_p7), %s1413_s18, 0 }
  0x49   : > { %167 = sbr.rel (%p1424_p7) target bundleno = 1677 (0x68d), region = 32  ;;  %s756_s26 = sshll.u32 (!%p1424_p7), %s1184_s29, 3 }
  0x4a   : > { %s170_s5 = scalar_lea.sflag (!%p1424_p7), [#allocation3], %s1184_s29  ;;  %s173_s6 = scalar_lea.vmem (!%p1424_p7), [#allocation2], %s756_s26 }
  0x50   : > { %988 = dma.done.wait (%p1425_p3), %s170_s5, 128  }
  0x51   : > { %990 = vsyncadd (%p1425_p3), %s170_s5, 4294967168  ;;  %p1426_p11 = scmp.eq.s32.totalorder %s1064_s16, 0 }
  0x53   : > { %992 = dma.done.wait (%p1426_p11), [#allocation6], 64   ;;  %p1427_p4 = pmov %p1426_p11 }
  0x54   : > { %v1198_v0 = vld [vmem:[%s173_s6] sm:$0xff]  ;;  %s1017_s20 = smov 1   ;;  %s1018_s22 = smov 127   ;;  %v200_v3 = vlaneseq  ;;  %vm248_vm0 = vcmask 7168   ;;  %vm238_vm1 = vcmask 1039360   ;;  %v1021_v26 = vmov 0.0  }
  0x55   : > { %994 = vsyncadd (%p1427_p4), [#allocation6], 4294967232  ;;  %244 = vrot.lane.b32.xlu1 %v1198_v0, %s1017_s20  ;;  %234 = vrot.lane.b32.xlu0 %v1198_v0, %s1018_s22  ;;  %v1206_v1 = vcombine.high %v1198_v0, %v1198_v0  ;;  %s1019_s18 = smov 16   ;;  %s1020_s27 = smov 112   ;;  %vm266_vm6 = vcmask 130048   ;;  %vm332_vm7 = vcmask 1043456  }
  0x56   : > { %v201_v4 = vand.u32 127, %v200_v3  ;;  %415 = vmatprep.mubr.f32.mxu0 %v1021_v26  ;;  %620 = vmatprep.mubr.f32.mxu1 %v1021_v26  ;;  %vm296_vm8 = vcmask 916480   ;;  %vm342_vm9 = vcmask 293888   ;;  %s771_s7 = sshll.u32 %s1064_s16, 7  ;;  %s199_s8 = scalar_lea.vmem [#allocation7], %s756_s26 }
  0x57   : > { %v850_v2 = vpack.i.bf16 %v1206_v1, %v1198_v0  ;;  %s668_s9 = sshll.u32 %s199_s8, 4  ;;  %s1362_s24 = scalar_lea.hbm %s1409_s3, %s771_s7  ;;  %s1364_s9 = int_to_ptr.vmem [resolvable:$true] %s668_s9 }
  0x58   : > { %v202_v5 = vadd.s32 128, %v201_v4  ;;  %v207_v6 = vand.u32 15, %v201_v4  ;;  %s654_s25 = scalar_lea.sflag [#allocation4], %s1184_s29  ;;  %s943_s28 = scalar_lea.vmem %s1364_s9, 128 }
  0x59   : > { %246 = vrot.lane.b32.xlu1 %v1206_v1, %s1017_s20  ;;  %236 = vrot.lane.b32.xlu0 %v1206_v1, %s1018_s22  ;;  %p944_p6 = scmp.ne.s32.totalorder %s1364_s9, %s943_s28  ;;  %s1022_s16 = smov [#allocation7]  }
  0x5a   : > { %v214_v7 = vand.u32 15, %v202_v5  ;;  %vm1215_vm2 = vcmp.eq.s32.totalorder %v207_v6, 0  ;;  %vm1240_vm5 = vcmp.eq.s32.totalorder %v207_v6, 15  ;;  %s947_s26 = sshll.u32 %s1022_s16, 4  ;;  %s948_s26 = int_to_ptr.vmem [resolvable:$false] %s947_s26 }
  0x5b   : > { %p945_p9 = pnand %p944_p6, %p1135_p8  ;;  %s949_s5 = scalar_lea.vmem %s948_s26, 256 }
  0x5c   : > { %vm1219_vm3 = vcmp.eq.s32.totalorder %v214_v7, 0  ;;  %vm1236_vm4 = vcmp.eq.s32.totalorder %v214_v7, 15  ;;  %p950_p13 = scmp.lt.s32.totalorder %s1364_s9, %s948_s26  ;;  %p951_p0 = scmp.lt.s32.totalorder %s949_s5, %s943_s28 }
  0x5d   : > { %851 = vrot.lane.b32.xlu0 %v850_v2, %s1019_s18  ;;  %p946_p12 = pneg %p945_p9 }
  0x5e   : > { %p952_p5 = por %p951_p0, %p950_p13 }
  0x60   : > { %p953_p10 = pnand %p952_p5, %p946_p12 }
  0xc7   : > { %v245_v8 = vpop.permute.xlu1 %244  ;;  %v235_v9 = vpop.permute.xlu0 %234 }
  0xc8   : > { %v252_v14 = vsel %vm248_vm0, %v1198_v0, %v245_v8 }
  0xcb   : > { %v247_v12 = vpop.permute.xlu1 %246  ;;  %v237_v13 = vpop.permute.xlu0 %236 }
  0xcc   : > { %v249_v15 = vsel %vm248_vm0, %v245_v8, %v247_v12  ;;  %v239_v16 = vsel %vm238_vm1, %v235_v9, %v237_v13  ;;  %v243_v17 = vsel %vm238_vm1, %v237_v13, %v1206_v1  ;;  %v341_v13 = vld [vmem:[#allocation5] sm:$0xf] }
  0xcd   : > { %v253_v18 = vsel %vm1215_vm2, %v239_v16, %v252_v14  ;;  %v254_v19 = vsel %vm1219_vm3, %v243_v17, %v249_v15  ;;  %v256_v24 = vsel %vm1236_vm4, %v249_v15, %v243_v17  ;;  %v255_v25 = vsel %vm1240_vm5, %v252_v14, %v239_v16 }
  0xce   : > { %v860_v20 = vpack.i.bf16 %v254_v19, %v253_v18  ;;  %v855_v21 = vpack.i.bf16 %v253_v18, %v1198_v0  ;;  %v320_v41 = vrot.slane %v254_v19, 4  ;;  %v319_v48 = vrot.slane %v253_v18, 4 }
  0xcf   : > { %v852_v27 = vpop.permute.xlu0 %851  ;;  %v324_v55 = vrot.slane %v256_v24, 4  ;;  %v323_v56 = vrot.slane %v255_v25, 4 }
  0xd0   : > { %861 = vrot.lane.b32.xlu0 %v860_v20, %s1019_s18  ;;  %856 = vrot.lane.b32.xlu1 %v855_v21, %s1020_s27  ;;  %v854_v28 = vunpack.i.h.bf16 %v852_v27  ;;  %v853_v29 = vunpack.i.l.bf16 %v852_v27 }
  0xd1   : > { %v338_v5 = vsel %vm332_vm7, %v1206_v1, %v324_v55  ;;  %v337_v6 = vsel %vm332_vm7, %v1198_v0, %v323_v56 }
  0xd2   : > { %v278_v30 = vsel %vm266_vm6, %v853_v29, %v854_v28 }
  0xd3   : > { %v316_v36 = vrot.slane %v278_v30, 4 }
  0xd4   : > { %288 = vrot.lane.b32.xlu0 %v256_v24, %s1019_s18  ;;  %286 = vrot.lane.b32.xlu1 %v255_v25, %s1019_s18 }
  0xd8   : > { %302 = vrot.lane.b32.xlu0 %v1206_v1, %s1020_s27  ;;  %282 = vrot.lane.b32.xlu1 %v255_v25, %s1020_s27 }
  0xdc   : > { %308 = vrot.lane.b32.xlu0 %v256_v24, %s1020_s27  ;;  %294 = vrot.lane.b32.xlu1 %v254_v19, %s1020_s27 }
 0x142   : > { %v857_v31 = vpop.permute.xlu1 %856  ;;  %v862_v32 = vpop.permute.xlu0 %861 }
 0x143   : > { %v858_v33 = vunpack.i.l.bf16 %v857_v31  ;;  %v864_v34 = vunpack.i.h.bf16 %v862_v32  ;;  %v863_v35 = vunpack.i.l.bf16 %v862_v32  ;;  %v859_v42 = vunpack.i.h.bf16 %v857_v31 }
 0x145   : > { %v280_v37 = vsel %vm266_vm6, %v858_v33, %v853_v29  ;;  %v267_v38 = vsel %vm266_vm6, %v863_v35, %v864_v34  ;;  %v270_v54 = vsel %vm266_vm6, %v859_v42, %v863_v35 }
 0x146   : > { %v287_v39 = vpop.permute.xlu1 %286  ;;  %v289_v40 = vpop.permute.xlu0 %288  ;;  %v315_v44 = vrot.slane %v280_v37, 4  ;;  %v334_v45 = vsel %vm332_vm7, %v267_v38, %v316_v36 }
 0x147   : > { %v290_v43 = vsel %vm266_vm6, %v287_v39, %v289_v40 }
 0x148   : > { %v336_v46 = vsel %vm332_vm7, %v290_v43, %v320_v41  ;;  %v333_v57 = vsel %vm332_vm7, %v270_v54, %v315_v44 }
 0x149   : > { %v772_v47 = vpack.c.bf16 %v336_v46, %v334_v45 }
 0x14a   : > { %v283_v49 = vpop.permute.xlu1 %282  ;;  %v303_v50 = vpop.permute.xlu0 %302 }
 0x14b   : > { %v293_v51 = vsel %vm266_vm6, %v283_v49, %v287_v39  ;;  %v304_v52 = vsel %vm296_vm8, %v858_v33, %v303_v50  ;;  %v307_v53 = vsel %vm296_vm8, %v303_v50, %v854_v28  ;;  %773 = vmatprep.subr.bf16.mxu0 %v772_v47 }
 0x14c   : > { %v335_v58 = vsel %vm332_vm7, %v293_v51, %v319_v48  ;;  %v328_v60 = vrot.slane %v304_v52, 4  ;;  %v329_v61 = vrot.slane %v307_v53, 4 }
 0x14d   : > { %v774_v59 = vpack.c.bf16 %v335_v58, %v333_v57 }
 0x14e   : > { %v295_v62 = vpop.permute.xlu1 %294  ;;  %v309_v7 = vpop.permute.xlu0 %308 }
 0x14f   : > { %v297_v63 = vsel %vm296_vm8, %v859_v42, %v295_v62  ;;  %v301_v2 = vsel %vm296_vm8, %v295_v62, %v864_v34  ;;  %775 = vmatpush1.bf16.msra.mxu0 %v774_v59  ;;  %v313_v12 = vsel %vm296_vm8, %v309_v7, %v289_v40  ;;  %v310_v14 = vsel %vm296_vm8, %v283_v49, %v309_v7 }
 0x150   : > { %v339_v3 = vsel %vm332_vm7, %v297_v63, %v328_v60  ;;  %v340_v4 = vsel %vm332_vm7, %v301_v2, %v329_v61 }
 0x151   : > { %v776_v8 = vpack.c.bf16 %v340_v4, %v338_v5  ;;  %v778_v9 = vpack.c.bf16 %v339_v3, %v337_v6 }
 0x153   : > { %777 = vmatprep.subr.bf16.mxu0 %v776_v8 }
 0x154   : > { %779 = vmatpush1.bf16.msra.mxu0 %v778_v9 }
 0x155   : > { %759 = vmatprep.subr.msk.mxu0 %vm332_vm7, %v313_v12 }
 0x158   : > { %760 = vmatpush1.msk.msra.mxu0 %vm332_vm7, %v310_v14 }
 0x159   : > { %761 = vmatmul.mubr.msk.f32.vlgmr.msra.gmra.mrb[0].mxu0 %vm342_vm9, %v341_v13 }
 0x22c   : > { %v417_v1 = vpop.f32.mrb[0].mxu0 }
 0x22d   : > { %v422_v15 = vsel %vm332_vm7, %v417_v1, 0.0  ;;  %v419_v16 = vpop.f32.mrb[1].mxu0 }
 0x22e   : > { %v423_v17 = vsel %vm332_vm7, %v419_v16, 0.0 }
 0x22f   : > { %v424_v18 = vadd.f32 %v423_v17, %v422_v15 }
 0x231   : > { %425 = vadd.xlane.f32.xlu1 %v424_v18 }
 0x2be   : > { %v426_v19 = vpop.xlane.xlu1 %425 }
 0x2bf   : > { %v427_v20 = vmul.f32 0.00390625, %v426_v19 }
 0x2c1   : > { %v428_v21 = vsub.f32 %v417_v1, %v427_v20  ;;  %v429_v24 = vsub.f32 %v419_v16, %v427_v20 }
 0x2c3   : > { %v430_v25 = vmul.f32 %v428_v21, %v428_v21  ;;  %v431_v26 = vmul.f32 %v429_v24, %v429_v24 }
 0x2c5   : > { %v432_v27 = vsel %vm332_vm7, %v430_v25, 0.0  ;;  %v433_v28 = vsel %vm332_vm7, %v431_v26, 0.0 }
 0x2c6   : > { %v434_v29 = vadd.f32 %v433_v28, %v432_v27 }
 0x2c8   : > { %435 = vadd.xlane.f32.xlu0 %v434_v29 }
 0x355   : > { %v436_v30 = vpop.xlane.xlu0 %435 }
 0x356   : > { %v437_v31 = vmul.f32 0.00390625, %v436_v30 }
 0x358   : > { %v438_v32 = vadd.f32 1e-05, %v437_v31 }
 0x35a   : > { %881 = vrsqrt.f32 %v438_v32 }
 0x364   : > { %v882_v33 = vpop.eup %881 }
 0x365   : > { %v440_v34 = vmul.f32 %v882_v33, %v428_v21  ;;  %v441_v35 = vmul.f32 %v882_v33, %v429_v24 }
 0x367   : > { %v1284_v36 = vmax.f32 %v440_v34, 0.0  ;;  %v1286_v37 = vmax.f32 %v441_v35, 0.0 }
 0x369   : > { %448 = vrot.lane.b32.xlu1 %v1286_v37, %s1018_s22  ;;  %446 = vrot.lane.b32.xlu0 %v1284_v36, %s1018_s22  ;;  %v865_v38 = vpack.i.bf16 %v1286_v37, %v1284_v36 }
 0x36d   : > { %454 = vrot.lane.b32.xlu1 %v1284_v36, %s1017_s20  ;;  %456 = vrot.lane.b32.xlu0 %v1286_v37, %s1017_s20 }
 0x371   : > { %866 = vrot.lane.b32.xlu1 %v865_v38, %s1019_s18  ;;  %v547_v38 = vld [vmem:[%s1408_s2] sm:$0xf] }
 0x3db   : > { %v449_v39 = vpop.permute.xlu1 %448  ;;  %v447_v40 = vpop.permute.xlu0 %446 }
 0x3dc   : > { %v453_v43 = vsel %vm238_vm1, %v449_v39, %v1286_v37  ;;  %v450_v44 = vsel %vm238_vm1, %v447_v40, %v449_v39 }
 0x3df   : > { %v455_v41 = vpop.permute.xlu1 %454  ;;  %v457_v42 = vpop.permute.xlu0 %456 }
 0x3e0   : > { %v461_v45 = vsel %vm248_vm0, %v1284_v36, %v455_v41  ;;  %v458_v46 = vsel %vm248_vm0, %v455_v41, %v457_v42 }
 0x3e1   : > { %v462_v47 = vsel %vm1215_vm2, %v450_v44, %v461_v45  ;;  %v463_v48 = vsel %vm1219_vm3, %v453_v43, %v458_v46  ;;  %v464_v51 = vsel %vm1240_vm5, %v461_v45, %v450_v44  ;;  %v465_v52 = vsel %vm1236_vm4, %v458_v46, %v453_v43 }
 0x3e2   : > { %v870_v49 = vpack.i.bf16 %v462_v47, %v1284_v36  ;;  %v875_v50 = vpack.i.bf16 %v463_v48, %v462_v47  ;;  %v527_v63 = vrot.slane %v463_v48, 4  ;;  %v526_v8 = vrot.slane %v462_v47, 4 }
 0x3e3   : > { %v867_v10 = vpop.permute.xlu1 %866  ;;  %v530_v16 = vrot.slane %v464_v51, 4  ;;  %v531_v17 = vrot.slane %v465_v52, 4 }
 0x3e4   : > { %871 = vrot.lane.b32.xlu0 %v870_v49, %s1020_s27  ;;  %876 = vrot.lane.b32.xlu1 %v875_v50, %s1019_s18  ;;  %v869_v11 = vunpack.i.h.bf16 %v867_v10  ;;  %v868_v23 = vunpack.i.l.bf16 %v867_v10 }
 0x3e5   : > { %v544_v30 = vsel %vm332_vm7, %v1286_v37, %v531_v17  ;;  %v543_v31 = vsel %vm332_vm7, %v1284_v36, %v530_v16 }
 0x3e6   : > { %v486_v57 = vsel %vm266_vm6, %v868_v23, %v869_v11 }
 0x3e7   : > { %v523_v62 = vrot.slane %v486_v57, 4 }
 0x3e8   : > { %494 = vrot.lane.b32.xlu0 %v464_v51, %s1019_s18  ;;  %496 = vrot.lane.b32.xlu1 %v465_v52, %s1019_s18 }
 0x3ec   : > { %490 = vrot.lane.b32.xlu0 %v464_v51, %s1020_s27  ;;  %509 = vrot.lane.b32.xlu1 %v1286_v37, %s1020_s27 }
 0x3f0   : > { %502 = vrot.lane.b32.xlu0 %v463_v48, %s1020_s27  ;;  %515 = vrot.lane.b32.xlu1 %v465_v52, %s1020_s27 }
 0x456   : > { %v877_v53 = vpop.permute.xlu1 %876  ;;  %v872_v54 = vpop.permute.xlu0 %871 }
 0x457   : > { %v879_v22 = vunpack.i.h.bf16 %v877_v53  ;;  %v878_v55 = vunpack.i.l.bf16 %v877_v53  ;;  %v873_v56 = vunpack.i.l.bf16 %v872_v54  ;;  %v874_v2 = vunpack.i.h.bf16 %v872_v54 }
 0x459   : > { %v488_v58 = vsel %vm266_vm6, %v873_v56, %v868_v23  ;;  %v475_v59 = vsel %vm266_vm6, %v878_v55, %v879_v22  ;;  %v478_v15 = vsel %vm266_vm6, %v874_v2, %v878_v55 }
 0x45a   : > { %v497_v60 = vpop.permute.xlu1 %496  ;;  %v495_v61 = vpop.permute.xlu0 %494  ;;  %v522_v4 = vrot.slane %v488_v58, 4  ;;  %v540_v5 = vsel %vm332_vm7, %v475_v59, %v523_v62 }
 0x45b   : > { %v498_v3 = vsel %vm266_vm6, %v495_v61, %v497_v60 }
 0x45c   : > { %v542_v6 = vsel %vm332_vm7, %v498_v3, %v527_v63  ;;  %v539_v18 = vsel %vm332_vm7, %v478_v15, %v522_v4 }
 0x45d   : > { %v780_v7 = vpack.c.bf16 %v542_v6, %v540_v5 }
 0x45e   : > { %v510_v9 = vpop.permute.xlu1 %509  ;;  %v491_v12 = vpop.permute.xlu0 %490 }
 0x45f   : > { %v511_v13 = vsel %vm296_vm8, %v873_v56, %v510_v9  ;;  %v514_v14 = vsel %vm296_vm8, %v510_v9, %v869_v11  ;;  %v501_v1 = vsel %vm266_vm6, %v491_v12, %v495_v61  ;;  %781 = vmatprep.subr.bf16.mxu1 %v780_v7 }
 0x460   : > { %v541_v19 = vsel %vm332_vm7, %v501_v1, %v526_v8  ;;  %v535_v21 = vrot.slane %v511_v13, 4  ;;  %v536_v24 = vrot.slane %v514_v14, 4 }
 0x461   : > { %v782_v20 = vpack.c.bf16 %v541_v19, %v539_v18 }
 0x462   : > { %v503_v25 = vpop.permute.xlu0 %502  ;;  %v516_v32 = vpop.permute.xlu1 %515 }
 0x463   : > { %v504_v26 = vsel %vm296_vm8, %v874_v2, %v503_v25  ;;  %v508_v27 = vsel %vm296_vm8, %v503_v25, %v879_v22  ;;  %783 = vmatpush1.bf16.msra.mxu1 %v782_v20  ;;  %v520_v35 = vsel %vm296_vm8, %v516_v32, %v497_v60  ;;  %v517_v39 = vsel %vm296_vm8, %v491_v12, %v516_v32 }
 0x464   : > { %v545_v28 = vsel %vm332_vm7, %v504_v26, %v535_v21  ;;  %v546_v29 = vsel %vm332_vm7, %v508_v27, %v536_v24 }
 0x465   : > { %v784_v33 = vpack.c.bf16 %v546_v29, %v544_v30  ;;  %v786_v34 = vpack.c.bf16 %v545_v28, %v543_v31 }
 0x467   : > { %785 = vmatprep.subr.bf16.mxu1 %v784_v33 }
 0x468   : > { %787 = vmatpush1.bf16.msra.mxu1 %v786_v34 }
 0x469   : > { %762 = vmatprep.subr.msk.mxu1 %vm332_vm7, %v520_v35 }
 0x46c   : > { %763 = vmatpush1.msk.msra.mxu1 %vm332_vm7, %v517_v39 }
 0x46d   : > { %764 = vmatmul.mubr.msk.f32.vlgmr.msra.gmra.mrb[0].mxu1 %vm342_vm9, %v547_v38 }
 0x540   : > { %v622_v36 = vpop.f32.mrb[0].mxu1 }
 0x541   : > { %v627_v37 = vsel %vm332_vm7, %v622_v36, 0.0  ;;  %v624_v40 = vpop.f32.mrb[1].mxu1 }
 0x542   : > { %v628_v41 = vsel %vm332_vm7, %v624_v40, 0.0 }
 0x543   : > { %v629_v42 = vadd.f32 %v628_v41, %v627_v37 }
 0x545   : > { %630 = vadd.xlane.f32.xlu0 %v629_v42 }
 0x5d2   : > { %v631_v43 = vpop.xlane.xlu0 %630 }
 0x5d3   : > { %v632_v44 = vmul.f32 0.00390625, %v631_v43 }
 0x5d5   : > { %v633_v45 = vsub.f32 %v622_v36, %v632_v44  ;;  %v634_v46 = vsub.f32 %v624_v40, %v632_v44 }
 0x5d7   : > { %v635_v47 = vmul.f32 %v633_v45, %v633_v45  ;;  %v636_v48 = vmul.f32 %v634_v46, %v634_v46 }
 0x5d9   : > { %v637_v49 = vsel %vm332_vm7, %v635_v47, 0.0  ;;  %v638_v50 = vsel %vm332_vm7, %v636_v48, 0.0 }
 0x5da   : > { %v639_v51 = vadd.f32 %v638_v50, %v637_v49 }
 0x5dc   : > { %640 = vadd.xlane.f32.xlu1 %v639_v51 }
 0x669   : > { %v641_v52 = vpop.xlane.xlu1 %640 }
 0x66a   : > { %v642_v10 = vmul.f32 0.00390625, %v641_v52 }
 0x66c   : > { %v643_v11 = vadd.f32 1e-05, %v642_v10 }
 0x66e   : > { %883 = vrsqrt.f32 %v643_v11 }
 0x678   : > { %v884_v23 = vpop.eup %883 }
 0x679   : > { %v645_v53 = vmul.f32 %v884_v23, %v633_v45  ;;  %v646_v54 = vmul.f32 %v884_v23, %v634_v46 }
 0x67b   : > { %v649_v22 = vcombine.low %v645_v53, %v646_v54 }
 0x67d   : > { %v651_v55 = vadd.f32 %v649_v22, %v1198_v0 }
 0x67f   : > { %652 = vst [vmem:[%s199_s8] sm:$0xff] %v651_v55 }
 0x680   : > { %956 = shalt.err (!%p953_p10)
}
 0x681   : > { %s957_s29 = scalar_lea.hbm %s1362_s24, 128  ;;  %s961_s22 = scalar_lea.hbm %s1409_s3, 256 }
 0x682   : > { %p958_p1 = scmp.ne.s32.totalorder %s1362_s24, %s957_s29  ;;  %p962_p3 = scmp.lt.u32.totalorder %s1362_s24, %s1409_s3 }
 0x683   : > { %p963_p11 = scmp.lt.u32.totalorder %s961_s22, %s957_s29  ;;  %p965_p6 = scmp.lt.u32.totalorder %s957_s29, %s1362_s24 }
 0x684   : > { %p959_p2 = pnand %p958_p1, %p1135_p8 }
 0x685   : > { %p964_p4 = por %p963_p11, %p962_p3 }
 0x686   : > { %p960_p7 = pneg %p959_p2 }
 0x687   : > { %p966_p9 = por %p965_p6, %p964_p4 }
 0x689   : > { %p967_p12 = pnand %p966_p9, %p960_p7 }
 0x68b   : > { %970 = shalt.err (!%p967_p12)
}
 0x68c   : > { %794 = dma.vmem_to_hbm [thread:$0]  (%p1135_p8), %s1364_s9, 128, %s1362_s24, %s654_s25  }
 0x68d PF: > { %s680_s30 = sand.u32 1, %s1001_s12   ;;  %p1436_p13 = scmp.ne.s32.totalorder %s1414_s19, 0 }
 0x68e   : > { %p1437_p0 = scmp.ge.s32.totalorder %s1013_s15, 2  ;;  %s681_s4 = scalar_lea.sflag [#allocation4], %s680_s30 }
 0x690   : > { %p805_p5 = pnand %p1437_p0, %p1436_p13 }
 0x692   : > { %996 = dma.done.wait (!%p805_p5), %s681_s4, 128  }
 0x693   : > { %998 = vsyncadd (!%p805_p5), %s681_s4, 4294967168  ;;  %p17_p10 = scmp.ge.s32.totalorder %s1091_s23, 4   ;;  %s1438_s12 = smov %s1005_s13 }
 0x694   : > { %s1439_s13 = smov %s1009_s14  ;;  %s1440_s14 = smov %s1127_s11 }
 0x695   : > { %s1441_s15 = smov %s1091_s23  ;;  %19 = sbr.rel (!%p17_p10) target bundleno = 6 (0x6), region = 81 }
 0x69c   :  { %686 = vsyncpa [#allocation3], 1 }
 0x69d   :  { %688 = vsyncpa [#allocation3 + $0x1], 1 }
 0x69e   :  { %689 = vsyncpa [#allocation6], 1 }
 0x69f   :  { %690 = vsyncpa [#allocation4], 1 }
 0x6a0   :  { %692 = vsyncpa [#allocation4 + $0x1], 1 }

</bundles_post_ra>
